<compile_context>
chip_gen: v7x
topology: tpu7x:2x2x1
jax: 0.10.0
libtpu: 0.0.40
codegen_flags: <defaults>
</compile_context>

<pallas_src>
import functools

import jax
import jax.numpy as jnp
from jax.experimental import pallas as pl
from jax.experimental.pallas import tpu as pltpu


# ---------------------------------------------------------------------------
# Fused Pallas kernel
# ---------------------------------------------------------------------------

def fused_rgcn_kernel(nk_ref, a_ref, xw_ref, loop_ref, o_ref, *, use_relu):
    """One grid step = (dst-row tile i, relation r, src K-tile k).

    nk_ref  : SMEM [R] int32   valid K-tile count per relation (scalar prefetch)
    a_ref   : [1, tm, tk] bf16  degree-normalized adjacency tile (A / deg)
    xw_ref  : [1, tk, No] bf16  precomputed X_src_r @ W_rel_r tile
    loop_ref: [tm, No]    f32   precomputed self-loop  X_dst @ W_loop + b
    o_ref   : [tm, No]    f32   output tile; doubles as the f32 accumulator
                                (its block index depends only on i, so it stays
                                 resident in VMEM across the whole (r, k) sweep)
    """
    r = pl.program_id(1)
    k = pl.program_id(2)
    nr = pl.num_programs(1)
    nk_total = pl.num_programs(2)

    @pl.when(jnp.logical_and(r == 0, k == 0))
    def _():
        o_ref[...] = jnp.zeros_like(o_ref)

    # Skip K tiles beyond this relation's valid range (pure padding).
    @pl.when(k < nk_ref[r])
    def _():
        o_ref[...] += jnp.dot(a_ref[0], xw_ref[0],
                              preferred_element_type=jnp.float32)

    # Finalize: add precomputed self-loop term, activation, single store.
    @pl.when(jnp.logical_and(r == nr - 1, k == nk_total - 1))
    def _():
        out = o_ref[...] + loop_ref[...]
        if use_relu:
            out = jnp.maximum(out, 0.0)
        # TODO(synk): dropout with p > 0 would use pltpu.prng_* bits; p=0.0 here (eval).
        o_ref[...] = out


# ---------------------------------------------------------------------------
# Wrapper: padding, tiling, pallas_call setup
# ---------------------------------------------------------------------------

def _round_up(x, m):
    return (x + m - 1) // m * m


def _cdiv(a, b):
    return (a + b - 1) // b


def _pad_to(x, shape):
    return jnp.pad(x, [(0, s - d) for d, s in zip(x.shape, shape)])


def _vmem_limit_bytes():
    """Per-generation scoped-VMEM limit (headroom vs. physical capacity)."""
    cap = 64 * 2 ** 20  # conservative fallback (v7x physical)
    try:
        info = pltpu.get_tpu_info()
        cap = int(getattr(info, "vmem_capacity_bytes", cap))
    except Exception:
        pass
    # 3/4 of physical: 96 MiB on v5e/v6e (128 MiB), 48 MiB on v7x (64 MiB).
    return min(cap * 3 // 4, 96 * 2 ** 20)


def _select_tiles(n_dst, k_max, out_pad, vmem_limit, tm_cap=512, tk_cap=1024):
    """Pick (tm, tk): minimize row padding, keep double-buffered set in VMEM."""
    tk = min(_round_up(k_max, 128), tk_cap)
    num_i = max(_cdiv(n_dst, tm_cap), 1)
    if n_dst >= 256:
        num_i = max(num_i, 2)  # >=2 row tiles so the 'parallel' axis feeds both v7x TCs
    tm = _round_up(_cdiv(n_dst, num_i), 16)

    def est(tm_, tk_):
        return (2 * tm_ * tk_ * 2          # A tiles, bf16, double-buffered
                + 2 * tk_ * out_pad * 2    # XW tiles, bf16
                + 2 * tm_ * out_pad * 4    # self-loop tiles, f32
                + 2 * tm_ * out_pad * 4)   # output tiles, f32

    budget = vmem_limit - 2 * 2 ** 20
    while est(tm, tk) > budget and tk > 128:
        tk = max(128, tk // 2)
    while est(tm, tk) > budget and tm > 16:
        tm = max(16, _round_up(tm // 2, 16))
    return tm, tk


def _fused_call(nk_r, a, xw, loop_term, *, tm, tk, use_relu, vmem_limit):
    num_r, m_pad, k_pad = a.shape
    out_pad = xw.shape[-1]
    grid = (m_pad // tm, num_r, k_pad // tk)

    # Clamp k so no new DMA is issued past a relation's valid K range
    # (same block index as the previous step => Pallas skips the fetch).
    def a_map(i, r, k, nk_ref):
        return (r, i, jnp.minimum(k, nk_ref[r] - 1))

    def xw_map(i, r, k, nk_ref):
        return (r, jnp.minimum(k, nk_ref[r] - 1), 0)

    kern = functools.partial(fused_rgcn_kernel, use_relu=use_relu)
    return pl.pallas_call(
        kern,
        out_shape=jax.ShapeDtypeStruct((m_pad, out_pad), jnp.float32),
        grid_spec=pltpu.PrefetchScalarGridSpec(
            num_scalar_prefetch=1,
            grid=grid,
            in_specs=[
                pl.BlockSpec((1, tm, tk), a_map),                              # A (bf16, /deg)
                pl.BlockSpec((1, tk, out_pad), xw_map),                        # XW (bf16)
                pl.BlockSpec((tm, out_pad), lambda i, r, k, nk_ref: (i, 0)),   # self-loop
            ],
            out_specs=pl.BlockSpec((tm, out_pad), lambda i, r, k, nk_ref: (i, 0)),
        ),
        compiler_params=pltpu.CompilerParams(
            # dst-row tiles independent -> parallel (megacore);
            # relation & src-K axes are the reduction -> arbitrary (innermost).
            dimension_semantics=("parallel", "arbitrary", "arbitrary"),
            vmem_limit_bytes=vmem_limit),
    )(nk_r, a, xw, loop_term)


def rel_graph_conv_layer(graph, inputs, params, use_relu=True):
    """graph : dict rel_name -> (src_ntype, dst_ntype, adj[N_dst, N_src] f32 0/1)
       inputs: dict ntype -> [N_ntype, in_feat] f32
       params: {'rel_weight': {rel: [in, out]},
                'loop_weight': {ntype: [in, out]},
                'loop_bias':   {ntype: [out]}}
    """
    # Group relations by destination ntype (HeteroGraphConv aggregate='sum').
    rels_by_dst = {}
    for rel_name, (src_t, dst_t, adj) in graph.items():
        rels_by_dst.setdefault(dst_t, []).append((rel_name, src_t, adj))

    out_feat = next(iter(params['loop_weight'].values())).shape[1]
    out_pad = _round_up(out_feat, 128)  # lane-dense output / unmasked stores
    vmem_limit = _vmem_limit_bytes()

    outputs = {}
    for dst_t, rels in rels_by_dst.items():
        n_dst = inputs[dst_t].shape[0]
        k_max = max(inputs[src_t].shape[0] for _, src_t, _ in rels)
        tm, tk = _select_tiles(n_dst, k_max, out_pad, vmem_limit)
        m_pad = _round_up(n_dst, tm)
        k_pad = _round_up(k_max, tk)

        a_list, xw_list, nk_list = [], [], []
        for rel_name, src_t, adj in rels:
            # GraphConv(norm='right'): fold 1/max(deg,1) into A host-side (bf16).
            deg = jnp.maximum(adj.sum(-1, keepdims=True), 1.0)
            a_norm = _pad_to(adj / deg, (m_pad, k_pad)).astype(jnp.bfloat16)
            a_list.append(a_norm)
            # Hoisted per-relation feature transform (one XLA matmul, bf16 stream).
            xw = jnp.dot(inputs[src_t], params['rel_weight'][rel_name],
                         preferred_element_type=jnp.float32)
            xw_list.append(_pad_to(xw, (k_pad, out_pad)).astype(jnp.bfloat16))
            nk_list.append(_cdiv(inputs[src_t].shape[0], tk))

        a_stack = jnp.stack(a_list, 0)       # [R, m_pad, k_pad] bf16
        xw_stack = jnp.stack(xw_list, 0)     # [R, k_pad, out_pad] bf16
        nk_r = jnp.asarray(nk_list, jnp.int32)

        # Precomputed self-loop Linear (f32) — added in the kernel finalize.
        loop = (jnp.dot(inputs[dst_t], params['loop_weight'][dst_t],
                        preferred_element_type=jnp.float32)
                + params['loop_bias'][dst_t])
        loop = _pad_to(loop, (m_pad, out_pad)).astype(jnp.float32)

        out_p = _fused_call(nk_r, a_stack, xw_stack, loop,
                            tm=tm, tk=tk, use_relu=use_relu,
                            vmem_limit=vmem_limit)
        outputs[dst_t] = out_p[:n_dst, :out_feat]
    return outputs


# ---------------------------------------------------------------------------
# Deterministic parameter / input construction + pure-JAX reference
# ---------------------------------------------------------------------------

def init_params(key, in_feat, out_feat, rel_names, ntypes):
    params = {'rel_weight': {}, 'loop_weight': {}, 'loop_bias': {}}
    bound = 1.0 / jnp.sqrt(in_feat)
    for rel in rel_names:
        key, k = jax.random.split(key)
        params['rel_weight'][rel] = jax.random.uniform(
            k, (in_feat, out_feat), jnp.float32, -bound, bound)
    for nt in ntypes:
        key, kw, kb = jax.random.split(key, 3)
        params['loop_weight'][nt] = jax.random.uniform(
            kw, (in_feat, out_feat), jnp.float32, -bound, bound)
        params['loop_bias'][nt] = jax.random.uniform(
            kb, (out_feat,), jnp.float32, -bound, bound)
    return params


def reference(graph, inputs, params, use_relu=True):
    msgs = {}
    for rel, (src_t, dst_t, adj) in graph.items():
        xw = inputs[src_t] @ params['rel_weight'][rel]
        deg = jnp.maximum(adj.sum(-1, keepdims=True), 1.0)
        msgs.setdefault(dst_t, []).append((adj @ xw) / deg)
    out = {}
    for dst_t, ms in msgs.items():
        h = sum(ms) + inputs[dst_t] @ params['loop_weight'][dst_t] \
            + params['loop_bias'][dst_t]
        out[dst_t] = jnp.maximum(h, 0.0) if use_relu else h
    return out


if __name__ == "__main__":
    in_feat, out_feat = 32, 64
    ntype_sizes = {'user': 16, 'item': 8}
    rel_defs = {
        'follows': ('user', 'user'),
        'buys': ('user', 'item'),
        'bought-by': ('item', 'user'),
    }

    key = jax.random.PRNGKey(0)

    # deterministic dense 0/1 adjacencies, shape [N_dst, N_src]
    graph = {}
    for rel, (src_t, dst_t) in rel_defs.items():
        key, k = jax.random.split(key)
        adj = jax.random.bernoulli(
            k, 0.3, (ntype_sizes[dst_t], ntype_sizes[src_t])).astype(jnp.float32)
        graph[rel] = (src_t, dst_t, adj)

    # deterministic node features
    inputs = {}
    for nt, n in ntype_sizes.items():
        key, k = jax.random.split(key)
        inputs[nt] = jax.random.normal(k, (n, in_feat), jnp.float32)

    key, kp = jax.random.split(key)
    params = init_params(kp, in_feat, out_feat, list(rel_defs), list(ntype_sizes))

    out = rel_graph_conv_layer(graph, inputs, params, use_relu=True)
    out = jax.tree_util.tree_map(jax.block_until_ready, out)

    ref = reference(graph, inputs, params, use_relu=True)
    for nt in ntype_sizes:
        assert out[nt].shape == (ntype_sizes[nt], out_feat), out[nt].shape
        assert out[nt].dtype == jnp.float32
        assert jnp.allclose(out[nt], ref[nt], rtol=5e-2, atol=1e-1), (
            nt, float(jnp.max(jnp.abs(out[nt] - ref[nt]))))

    print("KERNEL_OK")
</pallas_src>

<mosaic_0001>
module attributes {stable_mosaic.version = 11 : i64} {
  func.func @fused_rgcn_kernel(%arg0: i32, %arg1: i32, %arg2: i32, %arg3: memref<2xi32, #tpu.memory_space<smem>>, %arg4: memref<1x16x128xbf16, #tpu.memory_space<vmem>>, %arg5: memref<1x128x128xbf16, #tpu.memory_space<vmem>>, %arg6: memref<16x128xf32, #tpu.memory_space<vmem>>, %arg7: memref<16x128xf32, #tpu.memory_space<vmem>>) attributes {dimension_semantics = [#tpu.dimension_semantics<parallel>, #tpu.dimension_semantics<arbitrary>, #tpu.dimension_semantics<arbitrary>], iteration_bounds = array<i64: 1, 2, 1>, scalar_prefetch = 1 : i64, scratch_operands = 0 : i64, tpu.core_type = #tpu.core_type<tc>, window_params = [{transform_indices = @transform_0, window_bounds = array<i64: 1, 16, 128>}, {transform_indices = @transform_1, window_bounds = array<i64: 1, 128, 128>}, {transform_indices = @transform_2, window_bounds = array<i64: 16, 128>}, {transform_indices = @transform_3, window_bounds = array<i64: 16, 128>}]} {
    %c0_i32 = arith.constant 0 : i32
    %0 = arith.cmpi eq, %arg1, %c0_i32 : i32
    %c0_i32_0 = arith.constant 0 : i32
    %1 = arith.cmpi eq, %arg2, %c0_i32_0 : i32
    %2 = arith.andi %0, %1 : i1
    %3 = arith.extui %2 : i1 to i32
    %c0_i32_1 = arith.constant 0 : i32
    %4 = arith.cmpi ne, %3, %c0_i32_1 : i32
    scf.if %4 {
      %cst = arith.constant 0.000000e+00 : f32
      %15 = vector.broadcast %cst : f32 to vector<16x128xf32>
      %c0 = arith.constant 0 : index
      %c0_5 = arith.constant 0 : index
      %16 = vector.load %arg7[%c0, %c0_5] : memref<16x128xf32, #tpu.memory_space<vmem>>, vector<16x128xf32>
      tpu.vector_store %arg7[%c0, %c0_5], %15 {strides = array<i32>} : memref<16x128xf32, #tpu.memory_space<vmem>>, vector<16x128xf32>,
    } else {
    }
    %5 = arith.index_cast %arg1 : i32 to index
    %6 = memref.load %arg3[%5] : memref<2xi32, #tpu.memory_space<smem>>
    %7 = arith.cmpi slt, %arg2, %6 : i32
    %8 = arith.extui %7 : i1 to i32
    %c0_i32_2 = arith.constant 0 : i32
    %9 = arith.cmpi ne, %8, %c0_i32_2 : i32
    scf.if %9 {
      %c0 = arith.constant 0 : index
      %c0_5 = arith.constant 0 : index
      %15 = vector.load %arg7[%c0, %c0_5] : memref<16x128xf32, #tpu.memory_space<vmem>>, vector<16x128xf32>
      %c0_6 = arith.constant 0 : index
      %c0_7 = arith.constant 0 : index
      %c0_8 = arith.constant 0 : index
      %16 = vector.load %arg4[%c0_6, %c0_7, %c0_8] : memref<1x16x128xbf16, #tpu.memory_space<vmem>>, vector<1x16x128xbf16>
      %17 = vector.shape_cast %16 : vector<1x16x128xbf16> to vector<16x128xbf16>
      %c0_9 = arith.constant 0 : index
      %c0_10 = arith.constant 0 : index
      %c0_11 = arith.constant 0 : index
      %18 = vector.load %arg5[%c0_9, %c0_10, %c0_11] : memref<1x128x128xbf16, #tpu.memory_space<vmem>>, vector<1x128x128xbf16>
      %19 = vector.shape_cast %18 : vector<1x128x128xbf16> to vector<128x128xbf16>
      %cst = arith.constant dense<0.000000e+00> : vector<16x128xf32>
      %20 = tpu.matmul %17, %19, %cst {dimension_numbers = #tpu.dot_dimension_numbers<[1], [0], [0], [1], [0, 0, 1, 1], [], []>} : vector<16x128xbf16>, vector<128x128xbf16>, vector<16x128xf32> -> vector<16x128xf32>
      %21 = arith.addf %15, %20 : vector<16x128xf32>
      %c0_12 = arith.constant 0 : index
      %c0_13 = arith.constant 0 : index
      %22 = vector.load %arg7[%c0_12, %c0_13] : memref<16x128xf32, #tpu.memory_space<vmem>>, vector<16x128xf32>
      tpu.vector_store %arg7[%c0_12, %c0_13], %21 {strides = array<i32>} : memref<16x128xf32, #tpu.memory_space<vmem>>, vector<16x128xf32>,
    } else {
    }
    %c1_i32 = arith.constant 1 : i32
    %10 = arith.cmpi eq, %arg1, %c1_i32 : i32
    %c0_i32_3 = arith.constant 0 : i32
    %11 = arith.cmpi eq, %arg2, %c0_i32_3 : i32
    %12 = arith.andi %10, %11 : i1
    %13 = arith.extui %12 : i1 to i32
    %c0_i32_4 = arith.constant 0 : i32
    %14 = arith.cmpi ne, %13, %c0_i32_4 : i32
    scf.if %14 {
      %c0 = arith.constant 0 : index
      %c0_5 = arith.constant 0 : index
      %15 = vector.load %arg7[%c0, %c0_5] : memref<16x128xf32, #tpu.memory_space<vmem>>, vector<16x128xf32>
      %c0_6 = arith.constant 0 : index
      %c0_7 = arith.constant 0 : index
      %16 = vector.load %arg6[%c0_6, %c0_7] : memref<16x128xf32, #tpu.memory_space<vmem>>, vector<16x128xf32>
      %17 = arith.addf %15, %16 : vector<16x128xf32>
      %cst = arith.constant 0.000000e+00 : f32
      %18 = vector.broadcast %cst : f32 to vector<16x128xf32>
      %19 = arith.maximumf %17, %18 : vector<16x128xf32>
      %c0_8 = arith.constant 0 : index
      %c0_9 = arith.constant 0 : index
      %20 = vector.load %arg7[%c0_8, %c0_9] : memref<16x128xf32, #tpu.memory_space<vmem>>, vector<16x128xf32>
      tpu.vector_store %arg7[%c0_8, %c0_9], %19 {strides = array<i32>} : memref<16x128xf32, #tpu.memory_space<vmem>>, vector<16x128xf32>,
    } else {
    }
    return
  }
  func.func @transform_0(%arg0: i32, %arg1: i32, %arg2: i32, %arg3: memref<2xi32, #tpu.memory_space<smem>>) -> (i32, i32, i32) {
    %0 = arith.index_cast %arg1 : i32 to index
    %1 = memref.load %arg3[%0] : memref<2xi32, #tpu.memory_space<smem>>
    %c1_i32 = arith.constant 1 : i32
    %2 = arith.subi %1, %c1_i32 : i32
    %3 = arith.minsi %arg2, %2 : i32
    %c0_i32 = arith.constant 0 : i32
    return %arg1, %arg0, %3 : i32, i32, i32
  }
  func.func @transform_1(%arg0: i32, %arg1: i32, %arg2: i32, %arg3: memref<2xi32, #tpu.memory_space<smem>>) -> (i32, i32, i32) {
    %0 = arith.index_cast %arg1 : i32 to index
    %1 = memref.load %arg3[%0] : memref<2xi32, #tpu.memory_space<smem>>
    %c1_i32 = arith.constant 1 : i32
    %2 = arith.subi %1, %c1_i32 : i32
    %3 = arith.minsi %arg2, %2 : i32
    %c0_i32 = arith.constant 0 : i32
    %c0_i32_0 = arith.constant 0 : i32
    return %arg1, %3, %c0_i32 : i32, i32, i32
  }
  func.func @transform_2(%arg0: i32, %arg1: i32, %arg2: i32, %arg3: memref<2xi32, #tpu.memory_space<smem>>) -> (i32, i32) {
    %c0_i32 = arith.constant 0 : i32
    %c0_i32_0 = arith.constant 0 : i32
    return %arg0, %c0_i32 : i32, i32
  }
  func.func @transform_3(%arg0: i32, %arg1: i32, %arg2: i32, %arg3: memref<2xi32, #tpu.memory_space<smem>>) -> (i32, i32) {
    %c0_i32 = arith.constant 0 : i32
    %c0_i32_0 = arith.constant 0 : i32
    return %arg0, %c0_i32 : i32, i32
  }
}

</mosaic_0001>

<bundles_post_ra>
// kernel: tpu_custom_call.1
= control target key start
LH: loop header
LB: loop body
LE: loop exit
PB: predicated region body
PF: predicated region fallthrough
CT: control target
= control target key end

     0   :  { %s1377_s0 = inlined_call_operand.hbm [shape: s32[2], index: 0, kind: input, shape index: {}]   ;;  %s1378_s1 = inlined_call_operand.hbm [shape: bf16[2,16,128], index: 1, kind: input, shape index: {}]   ;;  %s1379_s2 = inlined_call_operand.hbm [shape: bf16[2,128,128], index: 2, kind: input, shape index: {}]   ;;  %s1380_s3 = inlined_call_operand.hbm [shape: f32[16,128], index: 3, kind: input, shape index: {}]   ;;  %s1381_s4 = inlined_call_operand.hbm [shape: f32[16,128], index: 4, kind: output, shape index: {}]  }
   0x1   :  { %1392 = sst [smem:[#allocation22_spill]] %s1378_s1  ;;  %s784_s17 = scalar_lea.hbm %s1377_s0, 16 }
   0x2   :  { %1393 = sst [smem:[#allocation23_spill]] %s1380_s3  ;;  %p785_p0 = scmp.ne.s32.totalorder %s1377_s0, %s784_s17 }
   0x3   :  { %p788_p1 = scmp.lt.u32.totalorder %s784_s17, %s1377_s0 }
   0x5   :  { %p790_p2 = pnand %p788_p1, %p785_p0 }
   0x7   :  { %793 = shalt.err (!%p790_p2)  }
   0x8   :  { %s998_s22 = smov [#allocation3]  }
   0x9   :  { %10 = dma.hbm_to_smem %s1377_s0, 16, %s998_s22, [#allocation2] }
   0xa   :  { %944 = dma.done.wait [#allocation2], 16 }
   0xb   :  { %945 = vsyncadd [#allocation2], 4294967280 }
   0xc   :  { %12 = sfence }
   0xd   :  { %13 = vsyncpa [#allocation5], 0 }
   0xe   :  { %15 = vsyncpa [#allocation5 + $0x1], 0 }
   0xf   :  { %16 = vsyncpa [#allocation8], 0 }
  0x10   :  { %18 = vsyncpa [#allocation8 + $0x1], 0 }
  0x11   :  { %19 = vsyncpa [#allocation6], 0  ;;  %s1049_s25 = smov 0   ;;  %s1051_s26 = smov 0  }
  0x12   :  { %s1053_s27 = smov 0   ;;  %s1055_s28 = smov 0  }
  0x13   :  { %s1057_s29 = smov 0   ;;  %s1059_s30 = smov 0  }
  0x14   :  { %s1061_s0 = smov 0   ;;  %s1063_s5 = smov 0  }
  0x15   :  { %s1065_s6 = smov 0  }
  0x16 LB: > { %s1091_s7 = sadd.s32 4294967295, %s996_s6   ;;  %p76_p3 = scmp.ne.s32.totalorder %s980_s29, %s976_s28  ;;  %s996_s6 = sphi %s1065_s6, %s25_s6   ;;  %s992_s5 = sphi %s1063_s5, %s1426_s5   ;;  %s988_s0 = sphi %s1061_s0, %s1425_s0   ;;  %s984_s30 = sphi %s1059_s30, %s1424_s30   ;;  %s980_s29 = sphi %s1057_s29, %s1423_s29   ;;  %s976_s28 = sphi %s1055_s28, %s1422_s28   ;;  %s972_s27 = sphi %s1053_s27, %s1421_s27   ;;  %s968_s26 = sphi %s1051_s26, %s1420_s26   ;;  %s964_s25 = sphi %s1049_s25, %s1419_s25  }
  0x17   : > { %p1382_p4 = scmp.eq.s32.totalorder %s1091_s7, 0  ;;  %p112_p5 = scmp.ne.s32.totalorder %s968_s26, %s964_s25 }
  0x18   : > { %p589_p6 = scmp.ge.s32.totalorder %s996_s6, 1  ;;  %p175_p7 = scmp.lt.s32.totalorder %s996_s6, 3 }
  0x19   : > { %p1100_p8 = por %p1382_p4, %p76_p3  ;;  %p1106_p9 = por %p112_p5, %p1382_p4 }
  0x1a   : > { %p1110_p10 = pnand %p589_p6, %p175_p7  ;;  %s999_s11 = smov [#allocation9]  }
  0x1b   : > { %s1394_s8 = scalar_select %p1100_p8, 1, 0 }
  0x1c   : > { %s1395_s9 = scalar_select %p1106_p9, 1, 0 }
  0x1d   : > { %s1396_s10 = scalar_select %p1110_p10, 1, 0 }
  0x1e   : > { %p671_p11 = pneg %p1110_p10  ;;  %s190_s12 = sshll.u32 %s999_s11, 4  ;;  %s191_s12 = int_to_ptr.vmem [resolvable:$true] %s190_s12 }
  0x1f   : > { %s1398_s3 = sld [smem:[#allocation23_spill]] }
  0x20   : > { %p1118_p12 = pnand %p671_p11, %p1382_p4 }
  0x22   : > { %p796_p0 = pneg %p1118_p12 }
  0x25   : > { %s794_s16 = scalar_lea.hbm %s1398_s3, 256 }
  0x26   : > { %p795_p13 = scmp.ne.s32.totalorder %s1398_s3, %s794_s16  ;;  %p801_p3 = scmp.lt.u32.totalorder %s794_s16, %s1398_s3 }
  0x28   : > { %p797_p1 = pnand %p796_p0, %p795_p13 }
  0x2a   : > { %p798_p2 = pneg %p797_p1 }
  0x2c   : > { %p803_p5 = pnand %p801_p3, %p798_p2 }
  0x2e   : > { %806 = shalt.err (!%p803_p5)
}
  0x2f   : > { %s807_s21 = scalar_lea.vmem %s191_s12, 256  ;;  %p815_p4 = scmp.lt.s32.totalorder %s191_s12, %s191_s12 }
  0x30   : > { %p808_p6 = scmp.ne.s32.totalorder %s191_s12, %s807_s21  ;;  %p816_p9 = scmp.lt.s32.totalorder %s807_s21, %s807_s21 }
  0x32   : > { %p810_p7 = pnand %p808_p6, %p796_p0  ;;  %p817_p8 = por %p816_p9, %p815_p4 }
  0x34   : > { %p811_p11 = pneg %p810_p7 }
  0x36   : > { %p818_p10 = pnand %p817_p8, %p811_p11 }
  0x38   : > { %821 = shalt.err (!%p818_p10)
}
  0x39   : > { %s1000_s22 = smov 128   ;;  %s1001_s23 = smov 8  }
  0x3a   : > { %674 = dma.hbm_to_vmem [thread:$0]  (!%p1118_p12), %s1398_s3, 256, %s191_s12, [#allocation8], %s1000_s22, %s1000_s22, %s1001_s23  }
  0x3b   : > { %s40_s28 = sadd.s32 1, %s992_s5  ;;  %s48_s11 = sld [smem:[#allocation3 + %s992_s5]] }
  0x3c   : > { %p42_p4 = scmp.ge.s32.totalorder %s40_s28, 2  ;;  %s86_s14 = sld [smem:[#allocation3 + %s992_s5]] }
  0x3d   : > { %s63_s18 = sadd.s32 1, %s984_s30  ;;  %p70_p9 = scmp.ne.s32.totalorder %s984_s30, %s980_s29 }
  0x3e   : > { %s1428_s28 = smov (%p42_p4, %s40_s28), 0  ;;  %p71_p10 = scmp.eq.s32.totalorder %s996_s6, 0 }
  0x3f   : > { %1399 = sst [smem:[#allocation20_spill]] %s1428_s28  ;;  %s56_s12 = ssub.s32 %s992_s5, %s1428_s28 }
  0x40   : > { %s52_s15 = sld [smem:[#allocation3 + %s1428_s28]]  ;;  %s1386_s21 = sand.u32 1, %s984_s30  }
  0x41   : > { %s90_s16 = sld [smem:[#allocation3 + %s1428_s28]]  ;;  %s581_s17 = sadd.s32 4294967295, %s48_s11 }
  0x42   : > { %p582_p8 = scmp.gt.s32.totalorder %s581_s17, 0  ;;  %s585_s19 = sadd.s32 4294967295, %s86_s14 }
  0x43   : > { %p586_p13 = scmp.gt.s32.totalorder %s585_s19, 0  ;;  %p72_p1 = por %p71_p10, %p70_p9 }
  0x44   : > { %s1430_s17 = smov (%p582_p8, %s581_s17), 0  ;;  %s592_s24 = sshll.u32 %s1386_s21, 3 }
  0x45   : > { %s1434_s19 = smov (%p586_p13, %s585_s19), 0  ;;  %p1387_p3 = scmp.lt.s32.totalorder %s996_s6, 2 }
  0x46   : > { %s583_s13 = sadd.s32 4294967295, %s52_s15  ;;  %p106_p7 = scmp.ne.s32.totalorder %s972_s27, %s968_s26 }
  0x47   : > { %p584_p12 = scmp.gt.s32.totalorder %s583_s13, 0  ;;  %s587_s20 = sadd.s32 4294967295, %s90_s16 }
  0x48   : > { %p588_p0 = scmp.gt.s32.totalorder %s587_s20, 0  ;;  %p1165_p5 = pnand %p1387_p3, %p72_p1 }
  0x49   : > { %s1432_s13 = smov (%p584_p12, %s583_s13), 0  ;;  %p1182_p11 = por %p106_p7, %p71_p10 }
  0x4a   : > { %s59_s22 = ssub.s32 %s1430_s17, %s1432_s13  ;;  %s1436_s20 = smov (%p588_p0, %s587_s20), 0 }
  0x4b   : > { %s60_s23 = sor.u32 %s59_s22, %s56_s12  ;;  %s95_s11 = ssub.s32 %s1434_s19, %s1436_s20 }
  0x4c   : > { %p61_p2 = scmp.eq.s32.totalorder %s60_s23, 0  ;;  %s96_s14 = sor.u32 %s95_s11, %s56_s12 }
  0x4d   : > { %s657_s16 = scalar_select %p72_p1, [#allocation3], [#allocation11] }
  0x4e   : > { %s1160_s25 = scalar_select %p61_p2, %s984_s30, %s63_s18  }
  0x4f   : > { %s658_s17 = scalar_select %p72_p1, %s992_s5, 0 }
  0x50   : > { %1400 = sst [smem:[#allocation21_spill]] %s1160_s25  ;;  %s1438_s16 = smov (!%p1387_p3, %s657_s16), [#allocation13] }
  0x51   : > { %s1440_s17 = smov (!%p1387_p3, %s658_s17), 0  ;;  %p97_p6 = scmp.eq.s32.totalorder %s96_s14, 0 }
  0x52   : > { %s209_s18 = sld [smem:[%s1438_s16 + %s1440_s17]]  ;;  %s208_s13 = scalar_lea.vmem [#allocation4], %s592_s24 }
  0x53   : > { %s222_s19 = sshll.u32 %s208_s13, 4  ;;  %s99_s20 = sadd.s32 1, %s972_s27  ;;  %s1187_s19 = int_to_ptr.vmem [resolvable:$true] %s222_s19 }
  0x54   : > { %s1178_s12 = scalar_select %p97_p6, %s972_s27, %s99_s20  }
  0x55   : > { %s595_s23 = sshll.u32 %s992_s5, 1  ;;  %s1403_s1 = sld [smem:[#allocation22_spill]] }
  0x56   : > { %s661_s14 = scalar_select %p1182_p11, %s992_s5, 0 }
  0x57   : > { %p1203_p8 = pnand %p1387_p3, %p1182_p11  ;;  %s1405_s24 = sand.u32 1, %s984_s30  }
  0x58   : > { %s593_s11 = sadd.s32 4294967295, %s209_s18  ;;  %s1209_s3 = scalar_lea.sflag [#allocation5], %s1405_s24 }
  0x59   : > { %p594_p4 = scmp.gt.s32.totalorder %s593_s11, 0  ;;  %p824_p10 = pneg %p1165_p5 }
  0x5a   : > { %s1404_s18 = scalar_select %p1203_p8, 1, 0 }
  0x5b   : > { %s1442_s11 = smov (%p594_p4, %s593_s11), 0 }
  0x5c   : > { %s219_s16 = sadd.s32 %s595_s23, %s1442_s11 }
  0x5d   : > { %s596_s17 = sshll.u32 %s219_s16, 6 }
  0x5e   : > { %s1197_s21 = scalar_lea.hbm %s1403_s1, %s596_s17  ;;  %s827_s17 = scalar_lea.hbm %s1403_s1, 256 }
  0x5f   : > { %s822_s23 = scalar_lea.hbm %s1197_s21, 128  ;;  %p828_p0 = scmp.lt.u32.totalorder %s1197_s21, %s1403_s1 }
  0x60   : > { %p823_p9 = scmp.ne.s32.totalorder %s1197_s21, %s822_s23  ;;  %p829_p1 = scmp.lt.u32.totalorder %s827_s17, %s822_s23 }
  0x61   : > { %p831_p6 = scmp.lt.u32.totalorder %s822_s23, %s1197_s21 }
  0x62   : > { %p825_p12 = pnand %p824_p10, %p823_p9  ;;  %p830_p2 = por %p829_p1, %p828_p0 }
  0x64   : > { %p826_p13 = pneg %p825_p12  ;;  %p832_p7 = por %p831_p6, %p830_p2 }
  0x66   : > { %p833_p4 = pnand %p832_p7, %p826_p13 }
  0x68   : > { %836 = shalt.err (!%p833_p4)
}
  0x69   : > { %s837_s24 = scalar_lea.vmem %s1187_s19, 128  ;;  %s1002_s11 = smov [#allocation4]  }
  0x6a   : > { %p838_p9 = scmp.ne.s32.totalorder %s1187_s19, %s837_s24  ;;  %s842_s16 = sshll.u32 %s1002_s11, 4  ;;  %s843_s16 = int_to_ptr.vmem [resolvable:$false] %s842_s16 }
  0x6b   : > { %s844_s13 = scalar_lea.vmem %s843_s16, 256  ;;  %p845_p8 = scmp.lt.s32.totalorder %s1187_s19, %s843_s16 }
  0x6c   : > { %p840_p12 = pnand %p838_p9, %p824_p10  ;;  %p846_p0 = scmp.lt.s32.totalorder %s844_s13, %s837_s24 }
  0x6e   : > { %p841_p3 = pneg %p840_p12  ;;  %p847_p1 = por %p846_p0, %p845_p8 }
  0x70   : > { %p848_p2 = pnand %p847_p1, %p841_p3 }
  0x72   : > { %851 = shalt.err (!%p848_p2)
}
  0x73   : > { %s1390_s23 = smov 64   ;;  %s1391_s17 = smov 4  }
  0x74   : > { %680 = dma.hbm_to_vmem [thread:$0]  (!%p1165_p5), %s1197_s21, 128, %s1187_s19, %s1209_s3, %s1390_s23, %s1390_s23, %s1391_s17  }
  0x75   : > { %s1406_s20 = scalar_select %p1182_p11, [#allocation3], [#allocation12] }
  0x76   : > { %p1407_p3 = scmp.lt.s32.totalorder %s996_s6, 2  ;;  %s234_s24 = sand.u32 1, %s972_s27  }
  0x77   : > { %s597_s16 = sshll.u32 %s234_s24, 6  ;;  %s232_s1 = sand.u32 1, %s996_s6  }
  0x78   : > { %s1444_s20 = smov (!%p1407_p3, %s1406_s20), [#allocation14]  ;;  %p1408_p8 = pmov %p1407_p3 }
  0x79   : > { %s601_s15 = sshll.u32 %s992_s5, 4  ;;  %s236_s28 = scalar_lea.vmem [#allocation7], %s597_s16 }
  0x7a   : > { %s1446_s14 = smov (!%p1408_p8, %s661_s14), 0  ;;  %s249_s25 = sshll.u32 %s236_s28, 4  ;;  %s1254_s25 = int_to_ptr.vmem [resolvable:$true] %s249_s25 }
  0x7b   : > { %s237_s11 = sld [smem:[%s1444_s20 + %s1446_s14]]  ;;  %s1261_s14 = scalar_lea.sflag [#allocation8], %s232_s1 }
  0x7c   : > { %p1409_p11 = scmp.ne.s32.totalorder %s1404_s18, 0  ;;  %s857_s23 = scalar_lea.hbm %s1379_s2, 2048 }
  0x7e   : > { %p854_p13 = pneg %p1409_p11 }
  0x81   : > { %s598_s13 = sadd.s32 4294967295, %s237_s11 }
  0x82   : > { %p599_p10 = scmp.gt.s32.totalorder %s598_s13, 0 }
  0x84   : > { %s1448_s13 = smov (%p599_p10, %s598_s13), 0 }
  0x85   : > { %s600_s3 = sshll.u32 %s1448_s13, 4 }
  0x86   : > { %s246_s21 = sadd.s32 %s601_s15, %s600_s3 }
  0x87   : > { %s602_s19 = sshll.u32 %s246_s21, 6 }
  0x88   : > { %s1259_s17 = scalar_lea.hbm %s1379_s2, %s602_s19 }
  0x89   : > { %s852_s20 = scalar_lea.hbm %s1259_s17, 1024  ;;  %p858_p4 = scmp.lt.u32.totalorder %s1259_s17, %s1379_s2 }
  0x8a   : > { %p853_p5 = scmp.ne.s32.totalorder %s1259_s17, %s852_s20  ;;  %p859_p9 = scmp.lt.u32.totalorder %s857_s23, %s852_s20 }
  0x8b   : > { %p861_p0 = scmp.lt.u32.totalorder %s852_s20, %s1259_s17 }
  0x8c   : > { %p855_p6 = pnand %p854_p13, %p853_p5  ;;  %p860_p12 = por %p859_p9, %p858_p4 }
  0x8e   : > { %p856_p7 = pneg %p855_p6  ;;  %p862_p1 = por %p861_p0, %p860_p12 }
  0x90   : > { %p863_p2 = pnand %p862_p1, %p856_p7 }
  0x92   : > { %866 = shalt.err (!%p863_p2)
}
  0x93   : > { %s867_s1 = scalar_lea.vmem %s1254_s25, 1024  ;;  %s1005_s13 = smov [#allocation7]  }
  0x94   : > { %p868_p3 = scmp.ne.s32.totalorder %s1254_s25, %s867_s1  ;;  %s872_s15 = sshll.u32 %s1005_s13, 4  ;;  %s873_s15 = int_to_ptr.vmem [resolvable:$false] %s872_s15 }
  0x95   : > { %s874_s3 = scalar_lea.vmem %s873_s15, 2048  ;;  %p875_p5 = scmp.lt.s32.totalorder %s1254_s25, %s873_s15 }
  0x96   : > { %p870_p8 = pnand %p868_p3, %p854_p13  ;;  %p876_p6 = scmp.lt.s32.totalorder %s874_s3, %s867_s1 }
  0x98   : > { %p871_p10 = pneg %p870_p8  ;;  %p877_p4 = por %p876_p6, %p875_p5 }
  0x9a   : > { %p878_p9 = pnand %p877_p4, %p871_p10 }
  0x9c   : > { %881 = shalt.err (!%p878_p9)
}
  0x9d   : > { %s1410_s21 = smov 4   ;;  %s1411_s19 = smov 64  }
  0x9e   : > { %685 = dma.hbm_to_vmem [thread:$0]  (!%p1409_p11), %s1259_s17, 1024, %s1254_s25, %s1261_s14, %s1411_s19, %s1411_s19, %s1410_s21  }
  0x9f   : > { %p1412_p13 = scmp.ne.s32.totalorder %s1396_s10, 0 }
  0xa0   : > { %s263_s22 = sand.u32 (!%p1412_p13), 1, %s980_s29   ;;  %p1413_p7 = scmp.ne.s32.totalorder (!%p1412_p13), %s1394_s8, 0 }
  0xa1   : > { %261 = sbr.rel (%p1412_p13) target bundleno = 481 (0x1e1), region = 32  ;;  %s1295_s20 = sshll.u32 (!%p1412_p13), %s263_s22, 3 }
  0xa2   : > { %s264_s28 = scalar_lea.sflag (!%p1412_p13), [#allocation5], %s263_s22  ;;  %s267_s24 = scalar_lea.vmem (!%p1412_p13), [#allocation4], %s1295_s20 }
  0xa8   : > { %947 = dma.done.wait (%p1413_p7), %s264_s28, 128  }
  0xa9   : > { %949 = vsyncadd (%p1413_p7), %s264_s28, 4294967168  ;;  %s272_s25 = sand.u32 1, %s1091_s7   ;;  %s274_s18 = sand.u32 1, %s968_s26  }
  0xaa   : > { %s605_s10 = sshll.u32 %s274_s18, 6  ;;  %s273_s17 = scalar_lea.sflag [#allocation8], %s272_s25 }
  0xab   : > { %s1304_s14 = scalar_lea.vmem [#allocation7], %s605_s10  ;;  %p1414_p11 = scmp.ne.s32.totalorder %s1395_s9, 0 }
  0xad   : > { %951 = dma.done.wait (%p1414_p11), %s273_s17, 1024  }
  0xae   : > { %953 = vsyncadd (%p1414_p11), %s273_s17, 4294966272  ;;  %p1415_p12 = scmp.eq.s32.totalorder %s1091_s7, 0 }
  0xb0   : > { %955 = dma.done.wait (%p1415_p12), [#allocation8], 256   ;;  %p1416_p0 = pmov %p1415_p12 }
  0xb1   : > { %p316_p1 = scmp.eq.s32.totalorder %s988_s0, 0 }
  0xb2   : > { %957 = vsyncadd (%p1416_p0), [#allocation8], 4294967040  ;;  %v1006_v0 = vmov (%p316_p1), 0.0  }
  0xb3   : > { %321 = sbr.rel (!%p316_p1) target bundleno = 186 (0xba), region = 48  ;;  %322 = vst [vmem:[#allocation10] sm:$0xff] (%p316_p1), %v1006_v0  ;;  %323 = vst [vmem:[#allocation10 + $0x8] sm:$0xff] (%p316_p1), %v1006_v0 }
  0xba PF: > { %s324_s8 = sld [smem:[#allocation3 + %s988_s0]] }
  0xc0   : > { %p609_p2 = scmp.le.s32.totalorder %s324_s8, 0 }
  0xc1   : > { %v775_v1 = vld [vmem:[%s1304_s14] sm:$0xff] (!%p609_p2)   ;;  %v1007_v2 = vmov (!%p609_p2), 0.0   ;;  %v776_v3 = vld [vmem:[%s1304_s14 + $0x8] sm:$0xff] (!%p609_p2)   ;;  %vm1008_vm0 = vmmov (!%p609_p2), 0   ;;  %v777_v4 = vld [vmem:[%s1304_s14 + $0x10] sm:$0xff] (!%p609_p2)  }
  0xc2   : > { %328 = sbr.rel (%p609_p2) target bundleno = 443 (0x1bb), region = 52  ;;  %635 = vmatprep.subr.bf16.mxu0 (!%p609_p2), %v1007_v2  ;;  %651 = vmatprep.mubr.msk.bf16.mxu0 (!%p609_p2), %vm1008_vm0, %v1007_v2  ;;  %v778_v5 = vld [vmem:[%s1304_s14 + $0x18] sm:$0xff] (!%p609_p2)   ;;  %v779_v6 = vld [vmem:[%s1304_s14 + $0x20] sm:$0xff] (!%p609_p2)   ;;  %v780_v7 = vld [vmem:[%s1304_s14 + $0x28] sm:$0xff] (!%p609_p2)  }
  0xc3   : > { %636 = vmatpush3.bf16.msra.mxu0 (!%p609_p2), %v775_v1  ;;  %v781_v8 = vld [vmem:[%s1304_s14 + $0x30] sm:$0xff] (!%p609_p2)   ;;  %v782_v9 = vld [vmem:[%s1304_s14 + $0x38] sm:$0xff] (!%p609_p2)  }
  0xc4   : > { %637 = vmatprep.subr.bf16.mxu0 (!%p609_p2), %v1007_v2  ;;  %v783_v10 = vld [vmem:[%s267_s24] sm:$0xff] (!%p609_p2)  }
  0xc5   : > { %v329_v11 = vld [vmem:[#allocation10] sm:$0xff] (!%p609_p2)  ;;  %v330_v13 = vld [vmem:[#allocation10 + $0x8] sm:$0xff] (!%p609_p2) }
  0xc7   : > { %638 = vmatpush3.bf16.msra.mxu0 (!%p609_p2), %v776_v3 }
  0xc8   : > { %639 = vmatprep.subr.bf16.mxu0 (!%p609_p2), %v1007_v2 }
  0xcb   : > { %640 = vmatpush3.bf16.msra.mxu0 %v777_v4 }
  0xcc   : > { %641 = vmatprep.subr.bf16.mxu0 %v1007_v2 }
  0xcf   : > { %642 = vmatpush3.bf16.msra.mxu0 %v778_v5 }
  0xd0   : > { %643 = vmatprep.subr.bf16.mxu0 %v1007_v2 }
  0xd3   : > { %644 = vmatpush3.bf16.msra.mxu0 %v779_v6 }
  0xd4   : > { %645 = vmatprep.subr.bf16.mxu0 %v1007_v2 }
  0xd7   : > { %646 = vmatpush3.bf16.msra.mxu0 %v780_v7 }
  0xd8   : > { %647 = vmatprep.subr.bf16.mxu0 %v1007_v2 }
  0xdb   : > { %648 = vmatpush3.bf16.msra.mxu0 %v781_v8 }
  0xdc   : > { %649 = vmatprep.subr.bf16.mxu0 %v1007_v2 }
  0xdf   : > { %650 = vmatpush3.bf16.msra.mxu0 %v782_v9 }
  0xe2   : > { %652 = vmatmul.mubr.bf16.vlgmr.msra.gmra.mrb[0].mxu0 %v783_v10 }
 0x1b5   : > { %v437_v12 = vpop.f32.mrb[0].mxu0 }
 0x1b6   : > { %v444_v14 = vadd.f32 %v437_v12, %v329_v11  ;;  %v653_v15 = vpop.f32.mrb[1].mxu0 }
 0x1b7   : > { %v440_v16 = vpop.f32.mrb[2].mxu0 }
 0x1b8   : > { %446 = vst [vmem:[#allocation10] sm:$0xff] %v444_v14  ;;  %v445_v17 = vadd.f32 %v440_v16, %v330_v13  ;;  %v654_v18 = vpop.f32.mrb[3].mxu0 }
 0x1ba   : > { %447 = vst [vmem:[#allocation10 + $0x8] sm:$0xff] %v445_v17 }
 0x1bb PF: > { %p448_p3 = scmp.eq.s32.totalorder %s988_s0, 1 }
 0x1bc   : > { %v455_v20 = vld [vmem:[#allocation9] sm:$0xff] (%p448_p3)  ;;  %v456_v23 = vld [vmem:[#allocation9 + $0x8] sm:$0xff] (%p448_p3) }
 0x1bd   : > { %452 = sbr.rel (!%p448_p3) target bundleno = 455 (0x1c7), region = 56 }
 0x1bf   : > { %v453_v19 = vld [vmem:[#allocation10] sm:$0xff] (%p448_p3) }
 0x1c0   : > { %v457_v22 = vadd.f32 (%p448_p3), %v455_v20, %v453_v19 }
 0x1c1   : > { %v454_v21 = vld [vmem:[#allocation10 + $0x8] sm:$0xff] (%p448_p3) }
 0x1c2   : > { %v458_v24 = vadd.f32 (%p448_p3), %v456_v23, %v454_v21  ;;  %v459_v25 = vmax.f32 (%p448_p3), %v457_v22, 0.0 }
 0x1c4   : > { %v460_v26 = vmax.f32 %v458_v24, 0.0  ;;  %461 = vst [vmem:[#allocation10] sm:$0xff] %v459_v25 }
 0x1c6   : > { %462 = vst [vmem:[#allocation10 + $0x8] sm:$0xff] %v460_v26 }
 0x1c7 PF: > { %p689_p8 = scmp.eq.s32.totalorder %s1091_s7, 1  ;;  %s1009_s9 = smov [#allocation10]  }
 0x1c8   : > { %s472_s23 = sshll.u32 %s1009_s9, 4  ;;  %s473_s23 = int_to_ptr.vmem [resolvable:$true] %s472_s23 }
 0x1c9   : > { %s882_s11 = scalar_lea.vmem %s473_s23, 256  ;;  %p889_p4 = scmp.lt.s32.totalorder %s473_s23, %s473_s23 }
 0x1ca   : > { %p883_p10 = scmp.ne.s32.totalorder %s473_s23, %s882_s11  ;;  %p890_p9 = scmp.lt.s32.totalorder %s882_s11, %s882_s11 }
 0x1cc   : > { %p884_p5 = pnand %p883_p10, %p689_p8  ;;  %p891_p13 = por %p890_p9, %p889_p4 }
 0x1ce   : > { %p885_p6 = pneg %p884_p5 }
 0x1d0   : > { %p892_p7 = pnand %p891_p13, %p885_p6 }
 0x1d2   : > { %895 = shalt.err (!%p892_p7)
}
 0x1d3   : > { %s896_s1 = scalar_lea.hbm %s1381_s4, 256 }
 0x1d4   : > { %p897_p11 = scmp.ne.s32.totalorder %s1381_s4, %s896_s1  ;;  %p902_p1 = scmp.lt.u32.totalorder %s896_s1, %s1381_s4 }
 0x1d6   : > { %p898_p12 = pnand %p897_p11, %p689_p8 }
 0x1d8   : > { %p899_p0 = pneg %p898_p12 }
 0x1da   : > { %p904_p2 = pnand %p902_p1, %p899_p0 }
 0x1dc   : > { %907 = shalt.err (!%p904_p2)
}
 0x1dd   : > { %s1010_s19 = smov 128   ;;  %s1011_s22 = smov 8  }
 0x1de   : > { %668 = dma.vmem_to_hbm [thread:$0]  (%p689_p8), %s473_s23, 256, %s1381_s4, [#allocation6], %s1010_s19, %s1010_s19, %s1011_s22  }
 0x1df   : > { %959 = dma.done.wait (%p689_p8), [#allocation6], 256  }
 0x1e0   : > { %961 = vsyncadd (%p689_p8), [#allocation6], 4294967040 }
 0x1e1 PF: > { %s25_s6 = sadd.s32 1, %s996_s6   ;;  %s1417_s24 = sld [smem:[#allocation21_spill]] }
 0x1e2   : > { %p22_p3 = scmp.ge.s32.totalorder %s25_s6, 4   ;;  %s1418_s18 = sld [smem:[#allocation20_spill]] }
 0x1e3   : > { %s1419_s25 = smov %s968_s26  ;;  %s1420_s26 = smov %s972_s27 }
 0x1e4   : > { %s1421_s27 = smov %s1178_s12  ;;  %s1422_s28 = smov %s980_s29 }
 0x1e5   : > { %s1423_s29 = smov %s984_s30  ;;  %s1425_s0 = smov %s992_s5 }
 0x1e6   :  { %24 = sbr.rel (!%p22_p3) target bundleno = 22 (0x16), region = 100 }
 0x1e7   : > { %s1424_s30 = smov %s1417_s24 }
 0x1e8   : > { %s1426_s5 = smov %s1418_s18 }
 0x1ed   :  { %488 = vsyncpa [#allocation5], 1 }
 0x1ee   :  { %490 = vsyncpa [#allocation5 + $0x1], 1 }
 0x1ef   :  { %491 = vsyncpa [#allocation8], 1 }
 0x1f0   :  { %493 = vsyncpa [#allocation8 + $0x1], 1 }
 0x1f1   :  { %494 = vsyncpa [#allocation6], 1 }
 0x1f2   :  { %496 = vsyncpa [#allocation6 + $0x1], 1 }

</bundles_post_ra>
